<compile_context>
chip_gen: v7x
topology: tpu7x:2x2x1
jax: 0.10.0
libtpu: 0.0.40
codegen_flags: <defaults>
</compile_context>

<pallas_src>
import jax
import jax.numpy as jnp
from jax.experimental import pallas as pl
from jax.experimental.pallas import tpu as pltpu

# TODO(synk): LSTM_Encoder / LSTMWordAttention / GRU_Decoder / BoWLoss /
# beam_search_decode are undefined external modules; their recurrent/attention
# compute is not reproducible from the given source, so encoder outputs are
# inputs here and decoder loss / ppl / bow loss / beam search are omitted.


def _definer_latent_kernel(
    defh_ref,   # (TB, 2H) f32  definition_hidden
    word_ref,   # (TB, 2H) f32  word_emb
    eps_ref,    # (TB, L)  f32  reparameterization noise
    w1_ref,     # (4H, 2L) bf16 fused ff / conditional_ff
    w2_ref,     # (2L, 4L) bf16 block-diag mean/logvar heads (post | prior)
    w3_ref,     # (L, D)   bf16 latent2hidden_def
    b_ref,      # (1, 2L+4L+D) f32 fused biases [b1 | b2 | b3]
    out_ref,    # (TB, 6L+D) f32 packed: [stats(4L) | z(L) | kld(L) | dec_h(D)]
):
    L = eps_ref.shape[-1]
    D = w3_ref.shape[-1]
    H2 = defh_ref.shape[-1]

    b1 = b_ref[:, 0:2 * L]            # (1, 2L)
    b2 = b_ref[:, 2 * L:6 * L]        # (1, 4L)
    b3 = b_ref[:, 6 * L:6 * L + D]    # (1, D)

    defh = defh_ref[...].astype(jnp.bfloat16)
    word = word_ref[...].astype(jnp.bfloat16)

    # Stage 1: split-K accumulation (no HBM concat of [def_hidden | word_emb]).
    #   cols [0:L]  = ff(cat(def, word));  cols [L:2L] = conditional_ff(word)
    acc1 = jnp.dot(defh, w1_ref[0:H2, :], preferred_element_type=jnp.float32)
    acc1 = acc1 + jnp.dot(word, w1_ref[H2:, :],
                          preferred_element_type=jnp.float32)
    h_cat = jnp.tanh(acc1 + b1)       # (TB, 2L) = [hidden | prior_project]

    # Stage 2: block-diag heads -> [mean_post | logvar_post | mean_prior | logvar_prior]
    stats = (
        jnp.dot(h_cat.astype(jnp.bfloat16), w2_ref[...],
                preferred_element_type=jnp.float32)
        + b2
    )
    mean_post = stats[:, 0 * L:1 * L]
    logvar_post = stats[:, 1 * L:2 * L]
    mean_prior = stats[:, 2 * L:3 * L]
    logvar_prior = stats[:, 3 * L:4 * L]

    # reparameterize: z = mean + eps * exp(0.5 * logvar)   (f32 elementwise)
    z = mean_post + eps_ref[...] * jnp.exp(0.5 * logvar_post)

    # kl_div (conditional branch); algebraically identical to
    #   lpr - lp + (exp(lp)^2 + diff^2) / (2 exp(lpr)^2) - 0.5
    # but uses 2 exps, no divide, no exp(logvar)^2 overflow.
    diff = mean_post - mean_prior
    kld = (
        logvar_prior
        - logvar_post
        + 0.5 * jnp.exp(2.0 * (logvar_post - logvar_prior))
        + 0.5 * diff * diff * jnp.exp(-2.0 * logvar_prior)
        - 0.5
    )

    # Stage 3: latent2hidden_def
    dec_h = (
        jnp.dot(z.astype(jnp.bfloat16), w3_ref[...],
                preferred_element_type=jnp.float32)
        + b3
    )

    # Lane-dense writeback: two full-128-lane stores (no masked partial stores).
    out_ref[:, 0:4 * L] = stats
    out_ref[:, 4 * L:] = jnp.concatenate([z, kld, dec_h], axis=-1)


def pack_definer_params(raw, encoder_hidden, latent_size):
    """Pack the individual nn.Linear weights into 3 fused bf16 matrices + 1 bias row."""
    H2 = 2 * encoder_hidden
    L = latent_size

    # Stage 1 weight (4H, 2L): cols [0:L] = W_ff, cols [L:2L] = [0; W_cff].
    w1 = jnp.zeros((2 * H2, 2 * L), jnp.float32)
    w1 = w1.at[:, :L].set(raw["w_ff"])
    w1 = w1.at[H2:, L:].set(raw["w_cff"])
    b1 = jnp.concatenate([raw["b_ff"], raw["b_cff"]], axis=-1)          # (1, 2L)

    # Stage 2 weight (2L, 4L): block-diagonal posterior / prior heads.
    w2 = jnp.zeros((2 * L, 4 * L), jnp.float32)
    w2 = w2.at[:L, 0 * L:1 * L].set(raw["w_mean"])
    w2 = w2.at[:L, 1 * L:2 * L].set(raw["w_logvar"])
    w2 = w2.at[L:, 2 * L:3 * L].set(raw["w_cmean"])
    w2 = w2.at[L:, 3 * L:4 * L].set(raw["w_clogvar"])
    b2 = jnp.concatenate(
        [raw["b_mean"], raw["b_logvar"], raw["b_cmean"], raw["b_clogvar"]],
        axis=-1)                                                         # (1, 4L)

    # All biases fused into one lane row: fewer input refs / DMA descriptors.
    b_all = jnp.concatenate([b1, b2, raw["b_l2h"]], axis=-1)             # (1, 2L+4L+D)

    return dict(
        w1=w1.astype(jnp.bfloat16),
        w2=w2.astype(jnp.bfloat16),
        w3=raw["w_l2h"].astype(jnp.bfloat16),
        b_all=b_all.astype(jnp.float32),
    )


def definer_latent_forward(def_hidden, word_emb, eps, packed):
    """Fused Definer latent path.

    def_hidden, word_emb : (B, 2*encoder_hidden) float32
    eps                  : (B, latent_size) float32 (randn_like for reparameterize)
    packed               : output of pack_definer_params
    Returns (mean_post, logvar_post, z, mean_prior, logvar_prior, decoder_hidden, KLD).
    """
    B, H2 = def_hidden.shape
    L = eps.shape[-1]
    D = packed["w3"].shape[-1]
    out_width = 6 * L + D

    w1, w2, w3, b_all = packed["w1"], packed["w2"], packed["w3"], packed["b_all"]

    # Batch tile: whole batch for small B; 256-row tiles for large B so the grid
    # amortizes per-step overhead and v7x's two TensorCores both get work.
    if B > 256 and B % 256 == 0:
        tb = 256
    else:
        tb = B
    grid = (B // tb,)

    # Advisory cost estimate so XLA can schedule/overlap around this small call.
    flops = (2 * B * (2 * H2) * (2 * L)      # stage 1 (both K-halves)
             + 2 * B * (2 * L) * (4 * L)     # stage 2
             + 2 * B * L * D)                # stage 3
    transcendentals = B * (2 * L) + 3 * B * L   # tanh + 3 exps
    bytes_accessed = (
        def_hidden.size * 4 + word_emb.size * 4 + eps.size * 4
        + w1.size * 2 + w2.size * 2 + w3.size * 2 + b_all.size * 4
        + B * out_width * 4
    )

    packed_out = pl.pallas_call(
        _definer_latent_kernel,
        grid=grid,
        in_specs=[
            pl.BlockSpec((tb, H2), lambda i: (i, 0)),     # def_hidden
            pl.BlockSpec((tb, H2), lambda i: (i, 0)),     # word_emb
            pl.BlockSpec((tb, L), lambda i: (i, 0)),      # eps
            pl.BlockSpec(w1.shape, lambda i: (0, 0)),     # weights stay resident
            pl.BlockSpec(w2.shape, lambda i: (0, 0)),
            pl.BlockSpec(w3.shape, lambda i: (0, 0)),
            pl.BlockSpec(b_all.shape, lambda i: (0, 0)),
        ],
        out_specs=pl.BlockSpec((tb, out_width), lambda i: (i, 0)),
        out_shape=jax.ShapeDtypeStruct((B, out_width), jnp.float32),
        compiler_params=pltpu.CompilerParams(
            dimension_semantics=("parallel",)),
        cost_estimate=pl.CostEstimate(
            flops=flops, transcendentals=transcendentals,
            bytes_accessed=bytes_accessed),
    )(
        def_hidden.astype(jnp.float32),
        word_emb.astype(jnp.float32),
        eps.astype(jnp.float32),
        w1, w2, w3, b_all,
    )

    mean_post = packed_out[:, 0 * L:1 * L]
    logvar_post = packed_out[:, 1 * L:2 * L]
    mean_prior = packed_out[:, 2 * L:3 * L]
    logvar_prior = packed_out[:, 3 * L:4 * L]
    z = packed_out[:, 4 * L:5 * L]
    kld = packed_out[:, 5 * L:6 * L]
    dec_h = packed_out[:, 6 * L:6 * L + D]
    return mean_post, logvar_post, z, mean_prior, logvar_prior, dec_h, kld


def _linear_params(key, fan_in, fan_out):
    # PyTorch nn.Linear default init: U(-1/sqrt(fan_in), 1/sqrt(fan_in)).
    kw, kb = jax.random.split(key)
    bound = 1.0 / (fan_in ** 0.5)
    w = jax.random.uniform(kw, (fan_in, fan_out), jnp.float32, -bound, bound)
    b = jax.random.uniform(kb, (1, fan_out), jnp.float32, -bound, bound)
    return w, b


if __name__ == "__main__":
    # Small, forward-consistent shapes.
    B = 8                 # batch
    encoder_hidden = 32   # -> def_hidden / word_emb are (B, 2*encoder_hidden)
    latent_size = 32
    decoder_hidden = 64

    key = jax.random.PRNGKey(0)
    keys = jax.random.split(key, 12)

    # "Encoder outputs" (stand-ins for LSTM_Encoder / LSTMWordAttention).
    def_hidden = jax.random.normal(keys[0], (B, 2 * encoder_hidden), jnp.float32)
    word_emb = jax.random.normal(keys[1], (B, 2 * encoder_hidden), jnp.float32)
    eps = jax.random.normal(keys[2], (B, latent_size), jnp.float32)

    # Raw (unfused) Linear params, torch-style init.
    w_ff, b_ff = _linear_params(keys[3], 4 * encoder_hidden, latent_size)
    w_mean, b_mean = _linear_params(keys[4], latent_size, latent_size)
    w_logvar, b_logvar = _linear_params(keys[5], latent_size, latent_size)
    w_cff, b_cff = _linear_params(keys[6], 2 * encoder_hidden, latent_size)
    w_cmean, b_cmean = _linear_params(keys[7], latent_size, latent_size)
    w_clogvar, b_clogvar = _linear_params(keys[8], latent_size, latent_size)
    w_l2h, b_l2h = _linear_params(keys[9], latent_size, decoder_hidden)

    raw = dict(
        w_ff=w_ff, b_ff=b_ff,
        w_mean=w_mean, b_mean=b_mean,
        w_logvar=w_logvar, b_logvar=b_logvar,
        w_cff=w_cff, b_cff=b_cff,
        w_cmean=w_cmean, b_cmean=b_cmean,
        w_clogvar=w_clogvar, b_clogvar=b_clogvar,
        w_l2h=w_l2h, b_l2h=b_l2h,
    )
    packed = pack_definer_params(raw, encoder_hidden, latent_size)

    outs = definer_latent_forward(def_hidden, word_emb, eps, packed)
    outs = jax.block_until_ready(outs)
    (mean_post, logvar_post, z, mean_prior, logvar_prior, dec_h, kld) = outs

    # --- Reference 1: bf16-matched (same matmul-operand precision as kernel) ---
    def mm(a, w):
        return jnp.dot(a.astype(jnp.bfloat16), w.astype(jnp.bfloat16),
                       preferred_element_type=jnp.float32)

    x_cat = jnp.concatenate([def_hidden, word_emb], -1)
    hidden_ref = jnp.tanh(mm(x_cat, w_ff) + b_ff)
    mp_ref = mm(hidden_ref, w_mean) + b_mean
    lp_ref = mm(hidden_ref, w_logvar) + b_logvar
    z_ref = mp_ref + eps * jnp.exp(0.5 * lp_ref)
    pp_ref = jnp.tanh(mm(word_emb, w_cff) + b_cff)
    mpr_ref = mm(pp_ref, w_cmean) + b_cmean
    lpr_ref = mm(pp_ref, w_clogvar) + b_clogvar
    dh_ref = mm(z_ref, w_l2h) + b_l2h
    sig_post = jnp.exp(lp_ref)
    sig_prior = jnp.exp(lpr_ref)
    kld_ref = (
        lpr_ref - lp_ref
        + (sig_post * sig_post + (mp_ref - mpr_ref) ** 2)
        / (2.0 * sig_prior * sig_prior)
        - 0.5
    )

    for got, ref in [
        (mean_post, mp_ref), (logvar_post, lp_ref), (z, z_ref),
        (mean_prior, mpr_ref), (logvar_prior, lpr_ref),
        (dec_h, dh_ref), (kld, kld_ref),
    ]:
        assert jnp.allclose(got, ref, atol=1e-3, rtol=1e-3)

    # --- Reference 2: full-f32 (PyTorch semantics), loose tolerance for bf16 ---
    hidden_f = jnp.tanh(x_cat @ w_ff + b_ff)
    mp_f = hidden_f @ w_mean + b_mean
    lp_f = hidden_f @ w_logvar + b_logvar
    z_f = mp_f + eps * jnp.exp(0.5 * lp_f)
    pp_f = jnp.tanh(word_emb @ w_cff + b_cff)
    mpr_f = pp_f @ w_cmean + b_cmean
    lpr_f = pp_f @ w_clogvar + b_clogvar
    dh_f = z_f @ w_l2h + b_l2h
    kld_f = (
        lpr_f - lp_f
        + (jnp.exp(lp_f) ** 2 + (mp_f - mpr_f) ** 2) / (2.0 * jnp.exp(lpr_f) ** 2)
        - 0.5
    )
    for got, ref in [
        (mean_post, mp_f), (logvar_post, lp_f), (z, z_f),
        (mean_prior, mpr_f), (logvar_prior, lpr_f),
        (dec_h, dh_f), (kld, kld_f),
    ]:
        assert jnp.allclose(got, ref, atol=5e-2, rtol=5e-2)

    print("KERNEL_OK")
</pallas_src>

<mosaic_0001>
module attributes {stable_mosaic.version = 11 : i64} {
  func.func @_definer_latent_kernel(%arg0: i32, %arg1: memref<8x64xf32, #tpu.memory_space<vmem>>, %arg2: memref<8x64xf32, #tpu.memory_space<vmem>>, %arg3: memref<8x32xf32, #tpu.memory_space<vmem>>, %arg4: memref<128x64xbf16, #tpu.memory_space<vmem>>, %arg5: memref<64x128xbf16, #tpu.memory_space<vmem>>, %arg6: memref<32x64xbf16, #tpu.memory_space<vmem>>, %arg7: memref<1x256xf32, #tpu.memory_space<vmem>>, %arg8: memref<8x256xf32, #tpu.memory_space<vmem>>) attributes {dimension_semantics = [#tpu.dimension_semantics<parallel>], iteration_bounds = array<i64: 1>, scalar_prefetch = 0 : i64, scratch_operands = 0 : i64, tpu.core_type = #tpu.core_type<tc>, window_params = [{transform_indices = @transform_0, window_bounds = array<i64: 8, 64>}, {transform_indices = @transform_1, window_bounds = array<i64: 8, 64>}, {transform_indices = @transform_2, window_bounds = array<i64: 8, 32>}, {pipeline_mode = #tpu.pipeline_mode<synchronous>, transform_indices = @transform_3, window_bounds = array<i64: 128, 64>}, {pipeline_mode = #tpu.pipeline_mode<synchronous>, transform_indices = @transform_4, window_bounds = array<i64: 64, 128>}, {pipeline_mode = #tpu.pipeline_mode<synchronous>, transform_indices = @transform_5, window_bounds = array<i64: 32, 64>}, {pipeline_mode = #tpu.pipeline_mode<synchronous>, transform_indices = @transform_6, window_bounds = array<i64: 1, 256>}, {transform_indices = @transform_7, window_bounds = array<i64: 8, 256>}]} {
    %c0 = arith.constant 0 : index
    %c0_0 = arith.constant 0 : index
    %0 = vector.load %arg7[%c0, %c0_0] : memref<1x256xf32, #tpu.memory_space<vmem>>, vector<1x64xf32>
    %c0_1 = arith.constant 0 : index
    %c64 = arith.constant 64 : index
    %1 = vector.load %arg7[%c0_1, %c64] : memref<1x256xf32, #tpu.memory_space<vmem>>, vector<1x128xf32>
    %c0_2 = arith.constant 0 : index
    %c192 = arith.constant 192 : index
    %2 = vector.load %arg7[%c0_2, %c192] : memref<1x256xf32, #tpu.memory_space<vmem>>, vector<1x64xf32>
    %c0_3 = arith.constant 0 : index
    %c0_4 = arith.constant 0 : index
    %3 = vector.load %arg1[%c0_3, %c0_4] : memref<8x64xf32, #tpu.memory_space<vmem>>, vector<8x64xf32>
    %4 = arith.truncf %3 : vector<8x64xf32> to vector<8x64xbf16>
    %c0_5 = arith.constant 0 : index
    %c0_6 = arith.constant 0 : index
    %5 = vector.load %arg2[%c0_5, %c0_6] : memref<8x64xf32, #tpu.memory_space<vmem>>, vector<8x64xf32>
    %6 = arith.truncf %5 : vector<8x64xf32> to vector<8x64xbf16>
    %c0_7 = arith.constant 0 : index
    %c0_8 = arith.constant 0 : index
    %7 = vector.load %arg4[%c0_7, %c0_8] : memref<128x64xbf16, #tpu.memory_space<vmem>>, vector<64x64xbf16>
    %cst = arith.constant dense<0.000000e+00> : vector<8x64xf32>
    %8 = tpu.matmul %4, %7, %cst {dimension_numbers = #tpu.dot_dimension_numbers<[1], [0], [0], [1], [0, 0, 1, 1], [], []>} : vector<8x64xbf16>, vector<64x64xbf16>, vector<8x64xf32> -> vector<8x64xf32>
    %c64_9 = arith.constant 64 : index
    %c0_10 = arith.constant 0 : index
    %9 = vector.load %arg4[%c64_9, %c0_10] : memref<128x64xbf16, #tpu.memory_space<vmem>>, vector<64x64xbf16>
    %cst_11 = arith.constant dense<0.000000e+00> : vector<8x64xf32>
    %10 = tpu.matmul %6, %9, %cst_11 {dimension_numbers = #tpu.dot_dimension_numbers<[1], [0], [0], [1], [0, 0, 1, 1], [], []>} : vector<8x64xbf16>, vector<64x64xbf16>, vector<8x64xf32> -> vector<8x64xf32>
    %11 = arith.addf %8, %10 : vector<8x64xf32>
    %12 = vector.broadcast %0 : vector<1x64xf32> to vector<8x64xf32>
    %13 = arith.addf %11, %12 : vector<8x64xf32>
    %14 = math.tanh %13 : vector<8x64xf32>
    %15 = arith.truncf %14 : vector<8x64xf32> to vector<8x64xbf16>
    %c0_12 = arith.constant 0 : index
    %c0_13 = arith.constant 0 : index
    %16 = vector.load %arg5[%c0_12, %c0_13] : memref<64x128xbf16, #tpu.memory_space<vmem>>, vector<64x128xbf16>
    %cst_14 = arith.constant dense<0.000000e+00> : vector<8x128xf32>
    %17 = tpu.matmul %15, %16, %cst_14 {dimension_numbers = #tpu.dot_dimension_numbers<[1], [0], [0], [1], [0, 0, 1, 1], [], []>} : vector<8x64xbf16>, vector<64x128xbf16>, vector<8x128xf32> -> vector<8x128xf32>
    %18 = vector.broadcast %1 : vector<1x128xf32> to vector<8x128xf32>
    %19 = arith.addf %17, %18 : vector<8x128xf32>
    %20 = vector.extract_strided_slice %19 {offsets = [0, 0], sizes = [8, 32], strides = [1, 1]} : vector<8x128xf32> to vector<8x32xf32>
    %21 = vector.extract_strided_slice %19 {offsets = [0, 32], sizes = [8, 32], strides = [1, 1]} : vector<8x128xf32> to vector<8x32xf32>
    %22 = vector.extract_strided_slice %19 {offsets = [0, 64], sizes = [8, 32], strides = [1, 1]} : vector<8x128xf32> to vector<8x32xf32>
    %23 = vector.extract_strided_slice %19 {offsets = [0, 96], sizes = [8, 32], strides = [1, 1]} : vector<8x128xf32> to vector<8x32xf32>
    %c0_15 = arith.constant 0 : index
    %c0_16 = arith.constant 0 : index
    %24 = vector.load %arg3[%c0_15, %c0_16] : memref<8x32xf32, #tpu.memory_space<vmem>>, vector<8x32xf32>
    %cst_17 = arith.constant 5.000000e-01 : f32
    %25 = vector.broadcast %cst_17 : f32 to vector<8x32xf32>
    %26 = arith.mulf %25, %21 : vector<8x32xf32>
    %27 = math.exp %26 : vector<8x32xf32>
    %28 = arith.mulf %24, %27 : vector<8x32xf32>
    %29 = arith.addf %20, %28 : vector<8x32xf32>
    %30 = arith.subf %20, %22 : vector<8x32xf32>
    %31 = arith.subf %23, %21 : vector<8x32xf32>
    %32 = arith.subf %21, %23 : vector<8x32xf32>
    %cst_18 = arith.constant 2.000000e+00 : f32
    %33 = vector.broadcast %cst_18 : f32 to vector<8x32xf32>
    %34 = arith.mulf %33, %32 : vector<8x32xf32>
    %35 = math.exp %34 : vector<8x32xf32>
    %cst_19 = arith.constant 5.000000e-01 : f32
    %36 = vector.broadcast %cst_19 : f32 to vector<8x32xf32>
    %37 = arith.mulf %36, %35 : vector<8x32xf32>
    %38 = arith.addf %31, %37 : vector<8x32xf32>
    %cst_20 = arith.constant 5.000000e-01 : f32
    %39 = vector.broadcast %cst_20 : f32 to vector<8x32xf32>
    %40 = arith.mulf %39, %30 : vector<8x32xf32>
    %41 = arith.mulf %40, %30 : vector<8x32xf32>
    %cst_21 = arith.constant -2.000000e+00 : f32
    %42 = vector.broadcast %cst_21 : f32 to vector<8x32xf32>
    %43 = arith.mulf %42, %23 : vector<8x32xf32>
    %44 = math.exp %43 : vector<8x32xf32>
    %45 = arith.mulf %41, %44 : vector<8x32xf32>
    %46 = arith.addf %38, %45 : vector<8x32xf32>
    %cst_22 = arith.constant 5.000000e-01 : f32
    %47 = vector.broadcast %cst_22 : f32 to vector<8x32xf32>
    %48 = arith.subf %46, %47 : vector<8x32xf32>
    %49 = arith.truncf %29 : vector<8x32xf32> to vector<8x32xbf16>
    %c0_23 = arith.constant 0 : index
    %c0_24 = arith.constant 0 : index
    %50 = vector.load %arg6[%c0_23, %c0_24] : memref<32x64xbf16, #tpu.memory_space<vmem>>, vector<32x64xbf16>
    %cst_25 = arith.constant dense<0.000000e+00> : vector<8x64xf32>
    %51 = tpu.matmul %49, %50, %cst_25 {dimension_numbers = #tpu.dot_dimension_numbers<[1], [0], [0], [1], [0, 0, 1, 1], [], []>} : vector<8x32xbf16>, vector<32x64xbf16>, vector<8x64xf32> -> vector<8x64xf32>
    %52 = vector.broadcast %2 : vector<1x64xf32> to vector<8x64xf32>
    %53 = arith.addf %51, %52 : vector<8x64xf32>
    %c0_26 = arith.constant 0 : index
    %c0_27 = arith.constant 0 : index
    %54 = vector.load %arg8[%c0_26, %c0_27] : memref<8x256xf32, #tpu.memory_space<vmem>>, vector<8x128xf32>
    tpu.vector_store %arg8[%c0_26, %c0_27], %19 {strides = array<i32>} : memref<8x256xf32, #tpu.memory_space<vmem>>, vector<8x128xf32>,
    %55 = tpu.concatenate %29, %48, %53 in 1 : vector<8x32xf32>, vector<8x32xf32>, vector<8x64xf32> -> vector<8x128xf32>
    %c0_28 = arith.constant 0 : index
    %c128 = arith.constant 128 : index
    %56 = vector.load %arg8[%c0_28, %c128] : memref<8x256xf32, #tpu.memory_space<vmem>>, vector<8x128xf32>
    tpu.vector_store %arg8[%c0_28, %c128], %55 {strides = array<i32>} : memref<8x256xf32, #tpu.memory_space<vmem>>, vector<8x128xf32>,
    return
  }
  func.func @transform_0(%arg0: i32) -> (i32, i32) {
    %c0_i32 = arith.constant 0 : i32
    %c0_i32_0 = arith.constant 0 : i32
    return %arg0, %c0_i32 : i32, i32
  }
  func.func @transform_1(%arg0: i32) -> (i32, i32) {
    %c0_i32 = arith.constant 0 : i32
    %c0_i32_0 = arith.constant 0 : i32
    return %arg0, %c0_i32 : i32, i32
  }
  func.func @transform_2(%arg0: i32) -> (i32, i32) {
    %c0_i32 = arith.constant 0 : i32
    %c0_i32_0 = arith.constant 0 : i32
    return %arg0, %c0_i32 : i32, i32
  }
  func.func @transform_3(%arg0: i32) -> (i32, i32) {
    %c0_i32 = arith.constant 0 : i32
    %c0_i32_0 = arith.constant 0 : i32
    %c0_i32_1 = arith.constant 0 : i32
    return %c0_i32, %c0_i32_0 : i32, i32
  }
  func.func @transform_4(%arg0: i32) -> (i32, i32) {
    %c0_i32 = arith.constant 0 : i32
    %c0_i32_0 = arith.constant 0 : i32
    %c0_i32_1 = arith.constant 0 : i32
    return %c0_i32, %c0_i32_0 : i32, i32
  }
  func.func @transform_5(%arg0: i32) -> (i32, i32) {
    %c0_i32 = arith.constant 0 : i32
    %c0_i32_0 = arith.constant 0 : i32
    %c0_i32_1 = arith.constant 0 : i32
    return %c0_i32, %c0_i32_0 : i32, i32
  }
  func.func @transform_6(%arg0: i32) -> (i32, i32) {
    %c0_i32 = arith.constant 0 : i32
    %c0_i32_0 = arith.constant 0 : i32
    %c0_i32_1 = arith.constant 0 : i32
    return %c0_i32, %c0_i32_0 : i32, i32
  }
  func.func @transform_7(%arg0: i32) -> (i32, i32) {
    %c0_i32 = arith.constant 0 : i32
    %c0_i32_0 = arith.constant 0 : i32
    return %arg0, %c0_i32 : i32, i32
  }
}

</mosaic_0001>

<bundles_post_ra>
// kernel: tpu_custom_call.1
= control target key start
LH: loop header
LB: loop body
LE: loop exit
PB: predicated region body
PF: predicated region fallthrough
CT: control target
= control target key end

     0   :  { %v555_v1 = vmov 0.0   ;;  %vm556_vm0 = vmmov 0   ;;  %s709_s0 = inlined_call_operand.vmem [shape: f32[8,64], index: 0, kind: input, shape index: {}]   ;;  %s710_s1 = inlined_call_operand.vmem [shape: f32[8,64], index: 1, kind: input, shape index: {}]   ;;  %s711_s2 = inlined_call_operand.vmem [shape: f32[8,32], index: 2, kind: input, shape index: {}]   ;;  %s712_s3 = inlined_call_operand.vmem [shape: bf16[128,64], index: 3, kind: input, shape index: {}]   ;;  %s713_s4 = inlined_call_operand.vmem [shape: bf16[64,128], index: 4, kind: input, shape index: {}]   ;;  %s714_s5 = inlined_call_operand.vmem [shape: bf16[32,64], index: 5, kind: input, shape index: {}]   ;;  %s715_s6 = inlined_call_operand.vmem [shape: f32[1,256], index: 6, kind: input, shape index: {}]   ;;  %s716_s7 = inlined_call_operand.hbm [shape: f32[8,256], index: 7, kind: output, shape index: {}]  }
   0x1   :  { %v509_v0 = vld [vmem:[%s712_s3 + $0x20] sm:$0xff]   ;;  %459 = vmatprep.subr.bf16.mxu0 %v555_v1  ;;  %471 = vmatprep.subr.bf16.mxu1 %v555_v1  ;;  %v511_v3 = vld [vmem:[%s712_s3 + $0x28] sm:$0xff]   ;;  %v513_v5 = vld [vmem:[%s712_s3 + $0x30] sm:$0xff]  }
   0x2   :  { %v510_v2 = vld [vmem:[%s712_s3] sm:$0xff]   ;;  %460 = vmatpush3.bf16.msra.mxu0 %v509_v0  ;;  %467 = vmatprep.mubr.msk.bf16.mxu0 %vm556_vm0, %v555_v1  ;;  %v512_v4 = vld [vmem:[%s712_s3 + $0x8] sm:$0xff]   ;;  %v514_v6 = vld [vmem:[%s712_s3 + $0x10] sm:$0xff]  }
   0x3   :  { %472 = vmatpush3.bf16.msra.mxu1 %v510_v2  ;;  %461 = vmatprep.subr.bf16.mxu0 %v555_v1  ;;  %v515_v7 = vld [vmem:[%s712_s3 + $0x38] sm:$0xff]   ;;  %v33_v8 = vld [vmem:[%s710_s1] sm:$0xff] }
   0x4   :  { %473 = vmatprep.subr.bf16.mxu1 %v555_v1  ;;  %479 = vmatprep.mubr.msk.bf16.mxu1 %vm556_vm0, %v555_v1  ;;  %v516_v9 = vld [vmem:[%s712_s3 + $0x18] sm:$0xff]   ;;  %v31_v10 = vld [vmem:[%s709_s0] sm:$0xff] }
   0x6   :  { %462 = vmatpush3.bf16.msra.mxu0 %v511_v3 }
   0x7   :  { %474 = vmatpush3.bf16.msra.mxu1 %v512_v4  ;;  %463 = vmatprep.subr.bf16.mxu0 %v555_v1 }
   0x8   :  { %475 = vmatprep.subr.bf16.mxu1 %v555_v1 }
   0xa   :  { %464 = vmatpush3.bf16.msra.mxu0 %v513_v5 }
   0xb   :  { %476 = vmatpush3.bf16.msra.mxu1 %v514_v6  ;;  %465 = vmatprep.subr.bf16.mxu0 %v555_v1 }
   0xc   :  { %477 = vmatprep.subr.bf16.mxu1 %v555_v1 }
   0xd   :  { %12 = vsyncpa [#allocation3], 0  ;;  %v34_v11 = vpack.c.bf16 %v33_v8, %v33_v8  ;;  %vm75_vm1 = vcmask 523264   ;;  %v32_v12 = vpack.c.bf16 %v31_v10, %v31_v10  ;;  %v517_v13 = vld [vmem:[%s713_s4] sm:$0xff]   ;;  %v518_v14 = vld [vmem:[%s713_s4 + $0x8] sm:$0xff]   ;;  %v204_v17 = vlaneseq  ;;  %s557_s28 = smov 64  }
   0xe   :  { %466 = vmatpush3.bf16.msra.mxu0 %v515_v7  ;;  %v519_v15 = vld [vmem:[%s713_s4 + $0x10] sm:$0xff]   ;;  %v520_v16 = vld [vmem:[%s713_s4 + $0x18] sm:$0xff]   ;;  %v29_v19 = vld [vmem:[%s715_s6] sm:$0x3]  ;;  %s558_s11 = smov 32   ;;  %s559_s12 = smov 96  }
   0xf   :  { %478 = vmatpush3.bf16.msra.mxu1 %v516_v9  ;;  %483 = vmatprep.subr.bf16.mxu0 %v555_v1  ;;  %v205_v18 = vshrl.u32 %v204_v17, 7  ;;  %v430_v25 = vld [vmem:[%s715_s6] ss:$0 sm:$0xff]  ;;  %v522_v50 = vld [vmem:[%s714_s5 + $0x8] sm:$0xff]   ;;  %vm350_vm2 = vcmask 261120   ;;  %s560_s15 = smov [#allocation2]  }
  0x10   :  { %495 = vmatprep.subr.bf16.mxu1 %v555_v1  ;;  %v521_v37 = vld [vmem:[%s714_s5] sm:$0xff]  }
  0x11   :  { %468 = vmatmul.mubr.msk.bf16.vlgmr.msra.gmra.mrb[0].mxu0 %vm75_vm1, %v34_v11  ;;  %v206_v20 = vsub.s32 0, %v205_v18  ;;  %v210_v21 = vsub.s32 1, %v205_v18  ;;  %v285_v53 = vld [vmem:[%s711_s2] sm:$0xff] }
  0x12   :  { %480 = vmatmul.mubr.msk.bf16.vlgmr.msra.gmra.mrb[0].mxu1 %vm75_vm1, %v32_v12  ;;  %491 = vmatprep.mubr.msk.bf16.mxu0 %vm556_vm0, %v555_v1  ;;  %v437_v4 = vld [vmem:[%s715_s6 + $0x1] ss:$0 sm:$0xff]  ;;  %s412_s6 = sshll.u32 %s560_s15, 4  ;;  %s413_s6 = int_to_ptr.vmem [resolvable:$true] %s412_s6 }
  0x13   :  { %499 = vmatprep.mubr.msk.bf16.mxu1 %vm556_vm0, %v555_v1  ;;  %484 = vmatpush3.bf16.msra.mxu0 %v517_v13  ;;  %v207_v22 = vrot.slane %v29_v19, %v206_v20  ;;  %v211_v23 = vrot.slane %v29_v19, %v210_v21  ;;  %s531_s16 = scalar_lea.vmem %s413_s6, 256  ;;  %p536_p1 = scmp.lt.s32.totalorder %s413_s6, %s413_s6 }
  0x14   :  { %485 = vmatprep.subr.bf16.mxu0 %v555_v1  ;;  %496 = vmatpush3.bf16.msra.mxu1 %v521_v37  ;;  %p532_p0 = scmp.ne.s32.totalorder %s413_s6, %s531_s16  ;;  %p537_p2 = scmp.lt.s32.totalorder %s531_s16, %s531_s16 }
  0x15   :  { %236 = vrot.lane.b32.xlu0 %v207_v22, %s557_s28  ;;  %497 = vmatprep.subr.bf16.mxu1 %v555_v1 }
  0x16   :  { %p538_p3 = por %p537_p2, %p536_p1 }
  0x17   :  { %486 = vmatpush3.bf16.msra.mxu0 %v518_v14 }
  0x18   :  { %487 = vmatprep.subr.bf16.mxu0 %v555_v1  ;;  %498 = vmatpush3.bf16.msra.mxu1 %v522_v50  ;;  %p539_p4 = pnand %p538_p3, %p532_p0 }
  0x19   :  { %238 = vrot.lane.b32.xlu0 %v211_v23, %s557_s28 }
  0x1b   :  { %488 = vmatpush3.bf16.msra.mxu0 %v519_v15 }
  0x1c   :  { %489 = vmatprep.subr.bf16.mxu0 %v555_v1 }
  0x1f   :  { %490 = vmatpush3.bf16.msra.mxu0 %v520_v16 }
  0x87   :  { %v237_v38 = vpop.permute.xlu0 %236 }
  0x8b   :  { %v239_v39 = vpop.permute.xlu0 %238 }
  0x8c   :  { %v240_v40 = vsel %vm75_vm1, %v237_v38, %v239_v39 }
  0xe4   :  { %v113_v24 = vpop.f32.mrb[0].mxu0 }
  0xe5   :  { %v180_v26 = vpop.f32.mrb[0].mxu1  ;;  %v469_v27 = vpop.f32.mrb[1].mxu0 }
  0xe6   :  { %v181_v28 = vadd.f32 %v180_v26, %v113_v24  ;;  %v481_v29 = vpop.f32.mrb[1].mxu1  ;;  %v116_v30 = vpop.f32.mrb[2].mxu0 }
  0xe7   :  { %v183_v31 = vpop.f32.mrb[2].mxu1  ;;  %v470_v32 = vpop.f32.mrb[3].mxu0 }
  0xe8   :  { %v192_v33 = vadd.f32 %v430_v25, %v181_v28  ;;  %v482_v34 = vpop.f32.mrb[3].mxu1 }
  0xea   :  { %523 = vtanh.f32 %v192_v33 }
  0xf4   :  { %v524_v35 = vpop.eup %523 }
  0xf5   :  { %v194_v36 = vpack.c.bf16 %v524_v35, %v524_v35 }
  0xf7   :  { %492 = vmatmul.mubr.msk.bf16.vlgmr.msra.gmra.mrb[4].mxu0 %vm75_vm1, %v194_v36 }
 0x1ca   :  { %v279_v41 = vpop.f32.mrb[4].mxu0 }
 0x1cb   :  { %v280_v42 = vadd.f32 %v279_v41, %v240_v40  ;;  %v493_v43 = vpop.f32.mrb[5].mxu0 }
 0x1cc   :  { %v282_v44 = vpop.f32.mrb[6].mxu0 }
 0x1cd   :  { %v311_v45 = vmul.f32 -2.0, %v280_v42  ;;  %394 = vst [vmem:[#allocation2] sm:$0xff] %v280_v42  ;;  %v494_v46 = vpop.f32.mrb[7].mxu0  ;;  %v286_v47 = vmul.f32 0.5, %v280_v42 }
 0x1cf   :  { %v312_v48 = vmul.f32 1.442695, %v311_v45  ;;  %v287_v49 = vmul.f32 1.442695, %v286_v47 }
 0x1d1   :  { %525 = vpow2.f32 %v312_v48 }
 0x1d2   :  { %527 = vpow2.f32 %v287_v49 }
 0x1db   :  { %v526_v51 = vpop.eup %525 }
 0x1dc   :  { %v528_v52 = vpop.eup %527  ;;  %315 = vrot.lane.b32.xlu0 %v526_v51, %s558_s11 }
 0x1dd   :  { %290 = vrot.lane.b32.xlu1 %v528_v52, %s559_s12 }
 0x1e1   :  { %296 = vrot.lane.b32.xlu1 %v280_v42, %s557_s28 }
 0x24e   :  { %v316_v0 = vpop.permute.xlu0 %315 }
 0x24f   :  { %v291_v54 = vpop.permute.xlu1 %290 }
 0x250   :  { %v293_v55 = vmul.f32 %v291_v54, %v285_v53 }
 0x252   :  { %v294_v56 = vadd.f32 %v293_v55, %v280_v42 }
 0x253   :  { %v297_v57 = vpop.permute.xlu1 %296 }
 0x254   :  { %v325_v58 = vpack.c.bf16 %v294_v56, %v294_v56  ;;  %v299_v59 = vsub.f32 %v280_v42, %v297_v57 }
 0x256   :  { %500 = vmatmul.mubr.msk.bf16.vlgmr.msra.gmra.mrb[4].mxu1 %vm350_vm2, %v325_v58  ;;  %v309_v60 = vmul.f32 0.5, %v299_v59  ;;  %v300_v61 = vmul.f32 2.0, %v299_v59 }
 0x258   :  { %v310_v62 = vmul.f32 %v309_v60, %v299_v59  ;;  %v301_v63 = vmul.f32 1.442695, %v300_v61 }
 0x25a   :  { %v318_v1 = vmul.f32 %v316_v0, %v310_v62  ;;  %529 = vpow2.f32 %v301_v63 }
 0x25c   :  { %320 = vrot.lane.b32.xlu0 %v318_v1, %s559_s12 }
 0x264   :  { %v530_v2 = vpop.eup %529 }
 0x265   :  { %v303_v3 = vmul.f32 0.5, %v530_v2 }
 0x267   :  { %305 = vrot.lane.b32.xlu1 %v303_v3, %s557_s28 }
 0x26b   :  { %347 = vrot.lane.b32.xlu1 %v437_v4, %s557_s28 }
 0x2ce   :  { %v321_v7 = vpop.permute.xlu0 %320 }
 0x2d9   :  { %v306_v5 = vpop.permute.xlu1 %305 }
 0x2da   :  { %v308_v6 = vadd.f32 %v306_v5, %v299_v59 }
 0x2dc   :  { %v323_v8 = vadd.f32 %v321_v7, %v308_v6 }
 0x2dd   :  { %v348_v10 = vpop.permute.xlu1 %347 }
 0x2de   :  { %v436_v9 = vadd.f32 -0.5, %v323_v8 }
 0x2e0   :  { %396 = vrot.lane.b32.xlu0 %v436_v9, %s557_s28 }
 0x329   :  { %v388_v11 = vpop.f32.mrb[4].mxu1 }
 0x32a   :  { %v389_v12 = vadd.f32 %v388_v11, %v348_v10  ;;  %v501_v13 = vpop.f32.mrb[5].mxu1 }
 0x32b   :  { %v391_v14 = vpop.f32.mrb[6].mxu1 }
 0x32c   :  { %v502_v15 = vpop.f32.mrb[7].mxu1  ;;  %400 = vrot.lane.b32.xlu1 %v389_v12, %s557_s28 }
 0x352   :  { %v397_v16 = vpop.permute.xlu0 %396 }
 0x353   :  { %v403_v17 = vsel %vm350_vm2, %v294_v56, %v397_v16 }
 0x39e   :  { %v401_v18 = vpop.permute.xlu1 %400 }
 0x39f   :  { %v404_v19 = vsel %vm75_vm1, %v403_v17, %v401_v18 }
 0x3a0   :  { %405 = vst [vmem:[#allocation2 + $0x8] sm:$0xff] %v404_v19 }
 0x3a1   :  { %542 = shalt.err (!%p539_p4)
}
 0x3a2   :  { %s543_s19 = scalar_lea.hbm %s716_s7, 256 }
 0x3a3   :  { %p544_p5 = scmp.ne.s32.totalorder %s716_s7, %s543_s19  ;;  %p547_p6 = scmp.lt.u32.totalorder %s543_s19, %s716_s7 }
 0x3a5   :  { %p549_p7 = pnand %p547_p6, %p544_p5 }
 0x3a7   :  { %552 = shalt.err (!%p549_p7)
}
 0x3a8   :  { %415 = dma.vmem_to_hbm [thread:$0]  %s413_s6, 256, %s716_s7, [#allocation3]  }
 0x3a9   :  { %553 = dma.done.wait [#allocation3], 256  }
 0x3aa   :  { %554 = vsyncadd [#allocation3], 4294967040 }
 0x3ab   :  { %419 = vsyncpa [#allocation3], 1 }

</bundles_post_ra>
